<compile_context>
chip_gen: v7x
topology: tpu7x:2x2x1
jax: 0.10.0
libtpu: 0.0.40
codegen_flags: <defaults>
</compile_context>

<pallas_src>
import functools

import jax
import jax.numpy as jnp
from jax.experimental import pallas as pl
from jax.experimental.pallas import tpu as pltpu

BN_EPS = 1e-5
LANE = 128


def _round_up(n, m):
    return ((n + m - 1) // m) * m


def _dae_kernel(x_ref,
                v1_ref, s1_ref, b1_ref,
                g2_ref, be2_ref,
                v2_ref, s2_ref, b2_ref,
                g3_ref, be3_ref,
                v3_ref, s3_ref, b3_ref,
                v4_ref, s4_ref, b4_ref,
                out_ref):
    """Single-invocation fused forward; all operands resident in VMEM.

    Weight-norm applied as a per-column scale on the MXU result:
        h = (x_bf16 @ vT_bf16) * s + b     (f32 accumulation)
    BatchNorm: training-mode batch stats (biased variance), single pass.
    """
    inv_b = 1.0 / x_ref.shape[0]  # static

    def wn_linear(h, v_ref, s_ref, b_ref):
        z = jnp.dot(h.astype(v_ref.dtype), v_ref[...],
                    preferred_element_type=jnp.float32)
        return z * s_ref[...] + b_ref[...]

    def batch_norm(h, g_ref, be_ref):
        ssum = jnp.sum(h, axis=0, keepdims=True)
        ssq = jnp.sum(h * h, axis=0, keepdims=True)
        mean = ssum * inv_b
        var = jnp.maximum(ssq * inv_b - mean * mean, 0.0)  # clamp rounding negatives
        return (h - mean) * (jax.lax.rsqrt(var + BN_EPS) * g_ref[...]) + be_ref[...]

    h1 = jnp.maximum(wn_linear(x_ref[...], v1_ref, s1_ref, b1_ref), 0.0)
    h2 = jnp.maximum(wn_linear(batch_norm(h1, g2_ref, be2_ref),
                               v2_ref, s2_ref, b2_ref), 0.0)
    h3 = jnp.maximum(wn_linear(batch_norm(h2, g3_ref, be3_ref),
                               v3_ref, s3_ref, b3_ref), 0.0)
    out_ref[...] = wn_linear(h3, v4_ref, s4_ref, b4_ref).astype(out_ref.dtype)


def prepare_params(params, matmul_dtype=jnp.bfloat16):
    """One-time parameter preparation (amortized across forward calls):
      * weight-norm reduced to per-output-column scale s = g / ||v||_2,
      * weights transposed to [in, out], zero-padded to 128-multiples, stored bf16,
      * scales / biases / BN params padded and kept f32
        (BN gamma padded with 1, beta with 0 -> padded columns stay exactly 0)."""
    def prep_linear(v, g, b):
        out_dim, in_dim = v.shape
        s = g.reshape(-1) / jnp.sqrt(jnp.sum(v * v, axis=1))
        in_p, out_p = _round_up(in_dim, LANE), _round_up(out_dim, LANE)
        vT = jnp.zeros((in_p, out_p), matmul_dtype)
        vT = vT.at[:in_dim, :out_dim].set(v.T.astype(matmul_dtype))
        s_p = jnp.zeros((1, out_p), jnp.float32).at[0, :out_dim].set(s)
        b_p = jnp.zeros((1, out_p), jnp.float32).at[0, :out_dim].set(b)
        return vT, s_p, b_p

    def prep_bn(gamma, beta):
        n = gamma.shape[0]
        n_p = _round_up(n, LANE)
        g_p = jnp.ones((1, n_p), jnp.float32).at[0, :n].set(gamma)
        b_p = jnp.zeros((1, n_p), jnp.float32).at[0, :n].set(beta)
        return g_p, b_p

    v1, s1, b1 = prep_linear(params["w1_v"], params["w1_g"], params["b1"])
    v2, s2, b2 = prep_linear(params["w2_v"], params["w2_g"], params["b2"])
    v3, s3, b3 = prep_linear(params["w3_v"], params["w3_g"], params["b3"])
    v4, s4, b4 = prep_linear(params["w4_v"], params["w4_g"], params["b4"])
    g2, be2 = prep_bn(params["bn2_gamma"], params["bn2_beta"])
    g3, be3 = prep_bn(params["bn3_gamma"], params["bn3_beta"])

    return {
        "v1": v1, "s1": s1, "b1": b1,
        "g2": g2, "be2": be2,
        "v2": v2, "s2": s2, "b2": b2,
        "g3": g3, "be3": be3,
        "v3": v3, "s3": s3, "b3": b3,
        "v4": v4, "s4": s4, "b4": b4,
    }


@functools.partial(jax.jit, static_argnames=("num_targets",))
def dae_forward(x, prep, num_targets):
    B, F = x.shape
    F_p = prep["v1"].shape[0]
    T_p = prep["v4"].shape[1]

    # Zero-pad features to the padded K dim (padded x cols * zero vT rows == 0).
    x_p = jnp.pad(x, ((0, 0), (0, F_p - F))) if F_p != F else x

    args = (
        x_p,
        prep["v1"], prep["s1"], prep["b1"],
        prep["g2"], prep["be2"],
        prep["v2"], prep["s2"], prep["b2"],
        prep["g3"], prep["be3"],
        prep["v3"], prep["s3"], prep["b3"],
        prep["v4"], prep["s4"], prep["b4"],
    )

    out_p = pl.pallas_call(
        _dae_kernel,
        out_shape=jax.ShapeDtypeStruct((B, T_p), jnp.float32),
        in_specs=[pl.BlockSpec(memory_space=pltpu.VMEM) for _ in args],
        out_specs=pl.BlockSpec(memory_space=pltpu.VMEM),
        compiler_params=pltpu.CompilerParams(vmem_limit_bytes=64 * 1024 * 1024),
    )(*args)

    # Lane-dense (128-wide) output slab in the kernel; slice to real width here.
    return out_p[:, :num_targets]


def init_params(key, num_features, num_targets, hidden_size, hidden_size2):
    ks = jax.random.split(key, 8)

    def lin(k, out_dim, in_dim):
        kv, kb = jax.random.split(k)
        v = jax.random.normal(kv, (out_dim, in_dim), jnp.float32) * 0.1
        g = jnp.sqrt(jnp.sum(v * v, axis=1, keepdims=True))  # torch init: g = ||v||
        b = jax.random.normal(kb, (out_dim,), jnp.float32) * 0.05
        return v, g, b

    w1_v, w1_g, b1 = lin(ks[0], hidden_size, num_features)
    w2_v, w2_g, b2 = lin(ks[1], hidden_size2, hidden_size)
    w3_v, w3_g, b3 = lin(ks[2], hidden_size, hidden_size2)
    w4_v, w4_g, b4 = lin(ks[3], num_targets, hidden_size)

    return {
        "w1_v": w1_v, "w1_g": w1_g, "b1": b1,
        "w2_v": w2_v, "w2_g": w2_g, "b2": b2,
        "w3_v": w3_v, "w3_g": w3_g, "b3": b3,
        "w4_v": w4_v, "w4_g": w4_g, "b4": b4,
        "bn2_gamma": jnp.ones((hidden_size,), jnp.float32),
        "bn2_beta": jnp.zeros((hidden_size,), jnp.float32),
        "bn3_gamma": jnp.ones((hidden_size2,), jnp.float32),
        "bn3_beta": jnp.zeros((hidden_size2,), jnp.float32),
    }


def reference_forward(x, params, matmul_dtype=jnp.bfloat16):
    """Pure-JAX reference mirroring the PyTorch forward (training-mode BN) with
    the same matmul precision policy as the kernel (bf16 MXU inputs, f32 acc)."""
    def wn_linear(h, v, g, b):
        s = g.reshape(-1) / jnp.sqrt(jnp.sum(v * v, axis=1))
        z = jnp.dot(h.astype(matmul_dtype), v.T.astype(matmul_dtype),
                    preferred_element_type=jnp.float32)
        return z * s + b

    def bn(h, gamma, beta):
        m = jnp.mean(h, axis=0)
        var = jnp.maximum(jnp.mean(h * h, axis=0) - m * m, 0.0)
        return (h - m) * jax.lax.rsqrt(var + BN_EPS) * gamma + beta

    x1 = jax.nn.relu(wn_linear(x, params["w1_v"], params["w1_g"], params["b1"]))
    x2 = bn(x1, params["bn2_gamma"], params["bn2_beta"])
    x2 = jax.nn.relu(wn_linear(x2, params["w2_v"], params["w2_g"], params["b2"]))
    x3 = bn(x2, params["bn3_gamma"], params["bn3_beta"])
    x3 = jax.nn.relu(wn_linear(x3, params["w3_v"], params["w3_g"], params["b3"]))
    return wn_linear(x3, params["w4_v"], params["w4_g"], params["b4"])


if __name__ == "__main__":
    num_features, num_targets = 32, 16
    hidden_size, hidden_size2 = 64, 48
    batch = 8

    key = jax.random.PRNGKey(0)
    kx, kp = jax.random.split(key)
    x = jax.random.normal(kx, (batch, num_features), jnp.float32)
    params = init_params(kp, num_features, num_targets, hidden_size, hidden_size2)

    prep = prepare_params(params)           # one-time glue: scale + transpose + pad
    out = dae_forward(x, prep, num_targets)
    out = jax.block_until_ready(out)

    ref = reference_forward(x, params)
    assert out.shape == (batch, num_targets)
    assert jnp.allclose(out, ref, atol=2e-3, rtol=2e-3), "mismatch vs reference"

    print("KERNEL_OK")
</pallas_src>

<mosaic_0001>
module attributes {stable_mosaic.version = 11 : i64} {
  func.func @_dae_kernel(%arg0: memref<8x128xf32, #tpu.memory_space<vmem>>, %arg1: memref<128x128xbf16, #tpu.memory_space<vmem>>, %arg2: memref<1x128xf32, #tpu.memory_space<vmem>>, %arg3: memref<1x128xf32, #tpu.memory_space<vmem>>, %arg4: memref<1x128xf32, #tpu.memory_space<vmem>>, %arg5: memref<1x128xf32, #tpu.memory_space<vmem>>, %arg6: memref<128x128xbf16, #tpu.memory_space<vmem>>, %arg7: memref<1x128xf32, #tpu.memory_space<vmem>>, %arg8: memref<1x128xf32, #tpu.memory_space<vmem>>, %arg9: memref<1x128xf32, #tpu.memory_space<vmem>>, %arg10: memref<1x128xf32, #tpu.memory_space<vmem>>, %arg11: memref<128x128xbf16, #tpu.memory_space<vmem>>, %arg12: memref<1x128xf32, #tpu.memory_space<vmem>>, %arg13: memref<1x128xf32, #tpu.memory_space<vmem>>, %arg14: memref<128x128xbf16, #tpu.memory_space<vmem>>, %arg15: memref<1x128xf32, #tpu.memory_space<vmem>>, %arg16: memref<1x128xf32, #tpu.memory_space<vmem>>, %arg17: memref<8x128xf32, #tpu.memory_space<vmem>>) attributes {dimension_semantics = [], scalar_prefetch = 0 : i64, scratch_operands = 0 : i64, tpu.core_type = #tpu.core_type<tc>} {
    %c0 = arith.constant 0 : index
    %c0_0 = arith.constant 0 : index
    %0 = vector.load %arg0[%c0, %c0_0] : memref<8x128xf32, #tpu.memory_space<vmem>>, vector<8x128xf32>
    %1 = arith.truncf %0 : vector<8x128xf32> to vector<8x128xbf16>
    %c0_1 = arith.constant 0 : index
    %c0_2 = arith.constant 0 : index
    %2 = vector.load %arg1[%c0_1, %c0_2] : memref<128x128xbf16, #tpu.memory_space<vmem>>, vector<128x128xbf16>
    %cst = arith.constant dense<0.000000e+00> : vector<8x128xf32>
    %3 = tpu.matmul %1, %2, %cst {dimension_numbers = #tpu.dot_dimension_numbers<[1], [0], [0], [1], [0, 0, 1, 1], [], []>} : vector<8x128xbf16>, vector<128x128xbf16>, vector<8x128xf32> -> vector<8x128xf32>
    %c0_3 = arith.constant 0 : index
    %c0_4 = arith.constant 0 : index
    %4 = vector.load %arg2[%c0_3, %c0_4] : memref<1x128xf32, #tpu.memory_space<vmem>>, vector<1x128xf32>
    %5 = vector.broadcast %4 : vector<1x128xf32> to vector<8x128xf32>
    %6 = arith.mulf %3, %5 : vector<8x128xf32>
    %c0_5 = arith.constant 0 : index
    %c0_6 = arith.constant 0 : index
    %7 = vector.load %arg3[%c0_5, %c0_6] : memref<1x128xf32, #tpu.memory_space<vmem>>, vector<1x128xf32>
    %8 = vector.broadcast %7 : vector<1x128xf32> to vector<8x128xf32>
    %9 = arith.addf %6, %8 : vector<8x128xf32>
    %cst_7 = arith.constant 0.000000e+00 : f32
    %10 = vector.broadcast %cst_7 : f32 to vector<8x128xf32>
    %11 = arith.maximumf %9, %10 : vector<8x128xf32>
    %cst_8 = arith.constant dense<0.000000e+00> : vector<128xf32>
    %12 = vector.multi_reduction <add>, %11, %cst_8 [0] : vector<8x128xf32> to vector<128xf32>
    %13 = vector.shape_cast %12 : vector<128xf32> to vector<1x128xf32>
    %14 = arith.mulf %11, %11 : vector<8x128xf32>
    %cst_9 = arith.constant dense<0.000000e+00> : vector<128xf32>
    %15 = vector.multi_reduction <add>, %14, %cst_9 [0] : vector<8x128xf32> to vector<128xf32>
    %16 = vector.shape_cast %15 : vector<128xf32> to vector<1x128xf32>
    %cst_10 = arith.constant 1.250000e-01 : f32
    %17 = vector.broadcast %cst_10 : f32 to vector<1x128xf32>
    %18 = arith.mulf %13, %17 : vector<1x128xf32>
    %cst_11 = arith.constant 1.250000e-01 : f32
    %19 = vector.broadcast %cst_11 : f32 to vector<1x128xf32>
    %20 = arith.mulf %16, %19 : vector<1x128xf32>
    %21 = arith.mulf %18, %18 : vector<1x128xf32>
    %22 = arith.subf %20, %21 : vector<1x128xf32>
    %cst_12 = arith.constant 0.000000e+00 : f32
    %23 = vector.broadcast %cst_12 : f32 to vector<1x128xf32>
    %24 = arith.maximumf %22, %23 : vector<1x128xf32>
    %25 = vector.broadcast %18 : vector<1x128xf32> to vector<8x128xf32>
    %26 = arith.subf %11, %25 : vector<8x128xf32>
    %cst_13 = arith.constant 9.99999974E-6 : f32
    %27 = vector.broadcast %cst_13 : f32 to vector<1x128xf32>
    %28 = arith.addf %24, %27 : vector<1x128xf32>
    %29 = math.rsqrt %28 : vector<1x128xf32>
    %c0_14 = arith.constant 0 : index
    %c0_15 = arith.constant 0 : index
    %30 = vector.load %arg4[%c0_14, %c0_15] : memref<1x128xf32, #tpu.memory_space<vmem>>, vector<1x128xf32>
    %31 = arith.mulf %29, %30 : vector<1x128xf32>
    %32 = vector.broadcast %31 : vector<1x128xf32> to vector<8x128xf32>
    %33 = arith.mulf %26, %32 : vector<8x128xf32>
    %c0_16 = arith.constant 0 : index
    %c0_17 = arith.constant 0 : index
    %34 = vector.load %arg5[%c0_16, %c0_17] : memref<1x128xf32, #tpu.memory_space<vmem>>, vector<1x128xf32>
    %35 = vector.broadcast %34 : vector<1x128xf32> to vector<8x128xf32>
    %36 = arith.addf %33, %35 : vector<8x128xf32>
    %37 = arith.truncf %36 : vector<8x128xf32> to vector<8x128xbf16>
    %c0_18 = arith.constant 0 : index
    %c0_19 = arith.constant 0 : index
    %38 = vector.load %arg6[%c0_18, %c0_19] : memref<128x128xbf16, #tpu.memory_space<vmem>>, vector<128x128xbf16>
    %cst_20 = arith.constant dense<0.000000e+00> : vector<8x128xf32>
    %39 = tpu.matmul %37, %38, %cst_20 {dimension_numbers = #tpu.dot_dimension_numbers<[1], [0], [0], [1], [0, 0, 1, 1], [], []>} : vector<8x128xbf16>, vector<128x128xbf16>, vector<8x128xf32> -> vector<8x128xf32>
    %c0_21 = arith.constant 0 : index
    %c0_22 = arith.constant 0 : index
    %40 = vector.load %arg7[%c0_21, %c0_22] : memref<1x128xf32, #tpu.memory_space<vmem>>, vector<1x128xf32>
    %41 = vector.broadcast %40 : vector<1x128xf32> to vector<8x128xf32>
    %42 = arith.mulf %39, %41 : vector<8x128xf32>
    %c0_23 = arith.constant 0 : index
    %c0_24 = arith.constant 0 : index
    %43 = vector.load %arg8[%c0_23, %c0_24] : memref<1x128xf32, #tpu.memory_space<vmem>>, vector<1x128xf32>
    %44 = vector.broadcast %43 : vector<1x128xf32> to vector<8x128xf32>
    %45 = arith.addf %42, %44 : vector<8x128xf32>
    %cst_25 = arith.constant 0.000000e+00 : f32
    %46 = vector.broadcast %cst_25 : f32 to vector<8x128xf32>
    %47 = arith.maximumf %45, %46 : vector<8x128xf32>
    %cst_26 = arith.constant dense<0.000000e+00> : vector<128xf32>
    %48 = vector.multi_reduction <add>, %47, %cst_26 [0] : vector<8x128xf32> to vector<128xf32>
    %49 = vector.shape_cast %48 : vector<128xf32> to vector<1x128xf32>
    %50 = arith.mulf %47, %47 : vector<8x128xf32>
    %cst_27 = arith.constant dense<0.000000e+00> : vector<128xf32>
    %51 = vector.multi_reduction <add>, %50, %cst_27 [0] : vector<8x128xf32> to vector<128xf32>
    %52 = vector.shape_cast %51 : vector<128xf32> to vector<1x128xf32>
    %cst_28 = arith.constant 1.250000e-01 : f32
    %53 = vector.broadcast %cst_28 : f32 to vector<1x128xf32>
    %54 = arith.mulf %49, %53 : vector<1x128xf32>
    %cst_29 = arith.constant 1.250000e-01 : f32
    %55 = vector.broadcast %cst_29 : f32 to vector<1x128xf32>
    %56 = arith.mulf %52, %55 : vector<1x128xf32>
    %57 = arith.mulf %54, %54 : vector<1x128xf32>
    %58 = arith.subf %56, %57 : vector<1x128xf32>
    %cst_30 = arith.constant 0.000000e+00 : f32
    %59 = vector.broadcast %cst_30 : f32 to vector<1x128xf32>
    %60 = arith.maximumf %58, %59 : vector<1x128xf32>
    %61 = vector.broadcast %54 : vector<1x128xf32> to vector<8x128xf32>
    %62 = arith.subf %47, %61 : vector<8x128xf32>
    %cst_31 = arith.constant 9.99999974E-6 : f32
    %63 = vector.broadcast %cst_31 : f32 to vector<1x128xf32>
    %64 = arith.addf %60, %63 : vector<1x128xf32>
    %65 = math.rsqrt %64 : vector<1x128xf32>
    %c0_32 = arith.constant 0 : index
    %c0_33 = arith.constant 0 : index
    %66 = vector.load %arg9[%c0_32, %c0_33] : memref<1x128xf32, #tpu.memory_space<vmem>>, vector<1x128xf32>
    %67 = arith.mulf %65, %66 : vector<1x128xf32>
    %68 = vector.broadcast %67 : vector<1x128xf32> to vector<8x128xf32>
    %69 = arith.mulf %62, %68 : vector<8x128xf32>
    %c0_34 = arith.constant 0 : index
    %c0_35 = arith.constant 0 : index
    %70 = vector.load %arg10[%c0_34, %c0_35] : memref<1x128xf32, #tpu.memory_space<vmem>>, vector<1x128xf32>
    %71 = vector.broadcast %70 : vector<1x128xf32> to vector<8x128xf32>
    %72 = arith.addf %69, %71 : vector<8x128xf32>
    %73 = arith.truncf %72 : vector<8x128xf32> to vector<8x128xbf16>
    %c0_36 = arith.constant 0 : index
    %c0_37 = arith.constant 0 : index
    %74 = vector.load %arg11[%c0_36, %c0_37] : memref<128x128xbf16, #tpu.memory_space<vmem>>, vector<128x128xbf16>
    %cst_38 = arith.constant dense<0.000000e+00> : vector<8x128xf32>
    %75 = tpu.matmul %73, %74, %cst_38 {dimension_numbers = #tpu.dot_dimension_numbers<[1], [0], [0], [1], [0, 0, 1, 1], [], []>} : vector<8x128xbf16>, vector<128x128xbf16>, vector<8x128xf32> -> vector<8x128xf32>
    %c0_39 = arith.constant 0 : index
    %c0_40 = arith.constant 0 : index
    %76 = vector.load %arg12[%c0_39, %c0_40] : memref<1x128xf32, #tpu.memory_space<vmem>>, vector<1x128xf32>
    %77 = vector.broadcast %76 : vector<1x128xf32> to vector<8x128xf32>
    %78 = arith.mulf %75, %77 : vector<8x128xf32>
    %c0_41 = arith.constant 0 : index
    %c0_42 = arith.constant 0 : index
    %79 = vector.load %arg13[%c0_41, %c0_42] : memref<1x128xf32, #tpu.memory_space<vmem>>, vector<1x128xf32>
    %80 = vector.broadcast %79 : vector<1x128xf32> to vector<8x128xf32>
    %81 = arith.addf %78, %80 : vector<8x128xf32>
    %cst_43 = arith.constant 0.000000e+00 : f32
    %82 = vector.broadcast %cst_43 : f32 to vector<8x128xf32>
    %83 = arith.maximumf %81, %82 : vector<8x128xf32>
    %84 = arith.truncf %83 : vector<8x128xf32> to vector<8x128xbf16>
    %c0_44 = arith.constant 0 : index
    %c0_45 = arith.constant 0 : index
    %85 = vector.load %arg14[%c0_44, %c0_45] : memref<128x128xbf16, #tpu.memory_space<vmem>>, vector<128x128xbf16>
    %cst_46 = arith.constant dense<0.000000e+00> : vector<8x128xf32>
    %86 = tpu.matmul %84, %85, %cst_46 {dimension_numbers = #tpu.dot_dimension_numbers<[1], [0], [0], [1], [0, 0, 1, 1], [], []>} : vector<8x128xbf16>, vector<128x128xbf16>, vector<8x128xf32> -> vector<8x128xf32>
    %c0_47 = arith.constant 0 : index
    %c0_48 = arith.constant 0 : index
    %87 = vector.load %arg15[%c0_47, %c0_48] : memref<1x128xf32, #tpu.memory_space<vmem>>, vector<1x128xf32>
    %88 = vector.broadcast %87 : vector<1x128xf32> to vector<8x128xf32>
    %89 = arith.mulf %86, %88 : vector<8x128xf32>
    %c0_49 = arith.constant 0 : index
    %c0_50 = arith.constant 0 : index
    %90 = vector.load %arg16[%c0_49, %c0_50] : memref<1x128xf32, #tpu.memory_space<vmem>>, vector<1x128xf32>
    %91 = vector.broadcast %90 : vector<1x128xf32> to vector<8x128xf32>
    %92 = arith.addf %89, %91 : vector<8x128xf32>
    %c0_51 = arith.constant 0 : index
    %c0_52 = arith.constant 0 : index
    %93 = vector.load %arg17[%c0_51, %c0_52] : memref<8x128xf32, #tpu.memory_space<vmem>>, vector<8x128xf32>
    tpu.vector_store %arg17[%c0_51, %c0_52], %92 {strides = array<i32>} : memref<8x128xf32, #tpu.memory_space<vmem>>, vector<8x128xf32>,
    return
  }
}

</mosaic_0001>

<bundles_post_ra>
// kernel: dae_forward.1
= control target key start
LH: loop header
LB: loop body
LE: loop exit
PB: predicated region body
PF: predicated region fallthrough
CT: control target
= control target key end

     0   :  { %s1865_s0 = inlined_call_operand.hbm [shape: f32[8,128], index: 0, kind: input, shape index: {}]   ;;  %s1866_s1 = inlined_call_operand.hbm [shape: bf16[128,128], index: 1, kind: input, shape index: {}]   ;;  %s1867_s2 = inlined_call_operand.hbm [shape: f32[1,128], index: 2, kind: input, shape index: {}]   ;;  %s1868_s3 = inlined_call_operand.hbm [shape: f32[1,128], index: 3, kind: input, shape index: {}]   ;;  %s1869_s4 = inlined_call_operand.hbm [shape: f32[1,128], index: 4, kind: input, shape index: {}]   ;;  %s1870_s5 = inlined_call_operand.hbm [shape: f32[1,128], index: 5, kind: input, shape index: {}]   ;;  %s1871_s6 = inlined_call_operand.hbm [shape: bf16[128,128], index: 6, kind: input, shape index: {}]   ;;  %s1872_s7 = inlined_call_operand.hbm [shape: f32[1,128], index: 7, kind: input, shape index: {}]   ;;  %s1873_s8 = inlined_call_operand.hbm [shape: f32[1,128], index: 8, kind: input, shape index: {}]   ;;  %s1874_s9 = inlined_call_operand.hbm [shape: f32[1,128], index: 9, kind: input, shape index: {}]   ;;  %s1875_s10 = inlined_call_operand.hbm [shape: f32[1,128], index: 10, kind: input, shape index: {}]   ;;  %s1876_s11 = inlined_call_operand.hbm [shape: bf16[128,128], index: 11, kind: input, shape index: {}]   ;;  %s1877_s12 = inlined_call_operand.hbm [shape: f32[1,128], index: 12, kind: input, shape index: {}]   ;;  %s1878_s13 = inlined_call_operand.hbm [shape: f32[1,128], index: 13, kind: input, shape index: {}]   ;;  %s1879_s14 = inlined_call_operand.hbm [shape: bf16[128,128], index: 14, kind: input, shape index: {}]   ;;  %s1880_s15 = inlined_call_operand.hbm [shape: f32[1,128], index: 15, kind: input, shape index: {}]   ;;  %s1881_s16 = inlined_call_operand.hbm [shape: f32[1,128], index: 16, kind: input, shape index: {}]   ;;  %s1882_s17 = inlined_call_operand.hbm [shape: f32[8,128], index: 17, kind: output, shape index: {}]  }
   0x1   :  { %1887 = sst [smem:[#allocation40_spill]] %s1865_s0 }
   0x2   :  { %1888 = sst [smem:[#allocation41_spill]] %s1866_s1 }
   0x3   :  { %1889 = sst [smem:[#allocation42_spill]] %s1881_s16 }
   0x4   :  { %1890 = sst [smem:[#allocation43_spill]] %s1882_s17 }
   0x5   :  { %22 = vsyncpa [#allocation3], 0 }
   0x6   :  { %23 = vsyncpa [#allocation6], 0 }
   0x7   :  { %24 = vsyncpa [#allocation9], 0 }
   0x8   :  { %25 = vsyncpa [#allocation12], 0 }
   0x9   :  { %26 = vsyncpa [#allocation15], 0 }
   0xa   :  { %27 = vsyncpa [#allocation18], 0 }
   0xb   :  { %28 = vsyncpa [#allocation21], 0 }
   0xc   :  { %29 = vsyncpa [#allocation24], 0 }
   0xd   :  { %30 = vsyncpa [#allocation27], 0 }
   0xe   :  { %31 = vsyncpa [#allocation4], 0  ;;  %s1478_s24 = smov [#allocation5]   ;;  %s1891_s28 = sld [smem:[#allocation41_spill]] }
   0xf   :  { %s47_s25 = sshll.u32 %s1478_s24, 4  ;;  %s48_s25 = int_to_ptr.vmem [resolvable:$true] %s47_s25 }
  0x14   :  { %s1062_s29 = scalar_lea.hbm %s1891_s28, 1024 }
  0x15   :  { %p1063_p0 = scmp.ne.s32.totalorder %s1891_s28, %s1062_s29  ;;  %p1066_p1 = scmp.lt.u32.totalorder %s1062_s29, %s1891_s28 }
  0x17   :  { %p1068_p2 = pnand %p1066_p1, %p1063_p0 }
  0x19   :  { %1071 = shalt.err (!%p1068_p2)
}
  0x1a   :  { %s1072_s1 = scalar_lea.vmem %s48_s25, 1024  ;;  %p1077_p4 = scmp.lt.s32.totalorder %s48_s25, %s48_s25 }
  0x1b   :  { %p1073_p3 = scmp.ne.s32.totalorder %s48_s25, %s1072_s1  ;;  %p1078_p5 = scmp.lt.s32.totalorder %s1072_s1, %s1072_s1 }
  0x1d   :  { %p1079_p6 = por %p1078_p5, %p1077_p4 }
  0x1f   :  { %p1080_p7 = pnand %p1079_p6, %p1073_p3 }
  0x21   :  { %1083 = shalt.err (!%p1080_p7)
}
  0x22   :  { %s1479_s20 = smov 64   ;;  %s1480_s21 = smov 4  }
  0x23   :  { %53 = dma.hbm_to_vmem [thread:$0]  %s1891_s28, 1024, %s48_s25, [#allocation6], %s1479_s20, %s1479_s20, %s1480_s21  }
  0x24   :  { %s1481_s24 = smov [#allocation8]   ;;  %s1482_s27 = smov [#allocation11]  }
  0x25   :  { %s70_s26 = sshll.u32 %s1481_s24, 4  ;;  %s90_s29 = sshll.u32 %s1482_s27, 4  ;;  %s71_s26 = int_to_ptr.vmem [resolvable:$true] %s70_s26  ;;  %s91_s29 = int_to_ptr.vmem [resolvable:$true] %s90_s29 }
  0x26   :  { %s1084_s18 = scalar_lea.hbm %s1868_s3, 16 }
  0x27   :  { %p1085_p8 = scmp.ne.s32.totalorder %s1868_s3, %s1084_s18  ;;  %p1088_p9 = scmp.lt.u32.totalorder %s1084_s18, %s1868_s3 }
  0x29   :  { %p1090_p10 = pnand %p1088_p9, %p1085_p8 }
  0x2b   :  { %1093 = shalt.err (!%p1090_p10)
}
  0x2c   :  { %s1094_s25 = scalar_lea.vmem %s71_s26, 16  ;;  %s1098_s28 = scalar_lea.vmem %s71_s26, 32 }
  0x2d   :  { %p1095_p11 = scmp.ne.s32.totalorder %s71_s26, %s1094_s25  ;;  %p1099_p12 = scmp.lt.s32.totalorder %s71_s26, %s71_s26 }
  0x2e   :  { %p1100_p13 = scmp.lt.s32.totalorder %s1098_s28, %s1094_s25 }
  0x30   :  { %p1101_p0 = por %p1100_p13, %p1099_p12 }
  0x32   :  { %p1102_p1 = pnand %p1101_p0, %p1095_p11 }
  0x34   :  { %1105 = shalt.err (!%p1102_p1)
}
  0x35   :  { %73 = dma.hbm_to_vmem [thread:$0]  %s1868_s3, 16, %s71_s26, [#allocation9]  }
  0x36   :  { %s1106_s16 = scalar_lea.hbm %s1870_s5, 16 }
  0x37   :  { %p1107_p2 = scmp.ne.s32.totalorder %s1870_s5, %s1106_s16  ;;  %p1110_p3 = scmp.lt.u32.totalorder %s1106_s16, %s1870_s5 }
  0x39   :  { %p1112_p4 = pnand %p1110_p3, %p1107_p2 }
  0x3b   :  { %1115 = shalt.err (!%p1112_p4)
}
  0x3c   :  { %s1116_s19 = scalar_lea.vmem %s91_s29, 16  ;;  %s1120_s1 = scalar_lea.vmem %s91_s29, 32 }
  0x3d   :  { %p1117_p5 = scmp.ne.s32.totalorder %s91_s29, %s1116_s19  ;;  %p1121_p6 = scmp.lt.s32.totalorder %s91_s29, %s91_s29 }
  0x3e   :  { %p1122_p7 = scmp.lt.s32.totalorder %s1120_s1, %s1116_s19 }
  0x40   :  { %p1123_p8 = por %p1122_p7, %p1121_p6 }
  0x42   :  { %p1124_p9 = pnand %p1123_p8, %p1117_p5 }
  0x44   :  { %1127 = shalt.err (!%p1124_p9)
}
  0x45   :  { %93 = dma.hbm_to_vmem [thread:$0]  %s1870_s5, 16, %s91_s29, [#allocation12]  }
  0x46   :  { %s1483_s25 = smov [#allocation14]   ;;  %s1484_s22 = smov [#allocation17]  }
  0x47   :  { %s112_s28 = sshll.u32 %s1483_s25, 4  ;;  %s132_s23 = sshll.u32 %s1484_s22, 4  ;;  %s113_s28 = int_to_ptr.vmem [resolvable:$true] %s112_s28  ;;  %s133_s23 = int_to_ptr.vmem [resolvable:$true] %s132_s23 }
  0x48   :  { %s1128_s16 = scalar_lea.hbm %s1872_s7, 16 }
  0x49   :  { %p1129_p10 = scmp.ne.s32.totalorder %s1872_s7, %s1128_s16  ;;  %p1132_p11 = scmp.lt.u32.totalorder %s1128_s16, %s1872_s7 }
  0x4b   :  { %p1134_p12 = pnand %p1132_p11, %p1129_p10 }
  0x4d   :  { %1137 = shalt.err (!%p1134_p12)
}
  0x4e   :  { %s1138_s5 = scalar_lea.vmem %s113_s28, 16  ;;  %s1142_s29 = scalar_lea.vmem %s113_s28, 32 }
  0x4f   :  { %p1139_p13 = scmp.ne.s32.totalorder %s113_s28, %s1138_s5  ;;  %p1143_p0 = scmp.lt.s32.totalorder %s113_s28, %s113_s28 }
  0x50   :  { %p1144_p1 = scmp.lt.s32.totalorder %s1142_s29, %s1138_s5 }
  0x52   :  { %p1145_p2 = por %p1144_p1, %p1143_p0 }
  0x54   :  { %p1146_p3 = pnand %p1145_p2, %p1139_p13 }
  0x56   :  { %1149 = shalt.err (!%p1146_p3)
}
  0x57   :  { %115 = dma.hbm_to_vmem [thread:$0]  %s1872_s7, 16, %s113_s28, [#allocation15]  }
  0x58   :  { %s1150_s25 = scalar_lea.hbm %s1874_s9, 16 }
  0x59   :  { %p1151_p4 = scmp.ne.s32.totalorder %s1874_s9, %s1150_s25  ;;  %p1154_p5 = scmp.lt.u32.totalorder %s1150_s25, %s1874_s9 }
  0x5b   :  { %p1156_p6 = pnand %p1154_p5, %p1151_p4 }
  0x5d   :  { %1159 = shalt.err (!%p1156_p6)
}
  0x5e   :  { %s1160_s17 = scalar_lea.vmem %s133_s23, 16  ;;  %s1164_s0 = scalar_lea.vmem %s133_s23, 32 }
  0x5f   :  { %p1161_p7 = scmp.ne.s32.totalorder %s133_s23, %s1160_s17  ;;  %p1165_p8 = scmp.lt.s32.totalorder %s133_s23, %s133_s23 }
  0x60   :  { %p1166_p9 = scmp.lt.s32.totalorder %s1164_s0, %s1160_s17 }
  0x62   :  { %p1167_p10 = por %p1166_p9, %p1165_p8 }
  0x64   :  { %p1168_p11 = pnand %p1167_p10, %p1161_p7 }
  0x66   :  { %1171 = shalt.err (!%p1168_p11)
}
  0x67   :  { %135 = dma.hbm_to_vmem [thread:$0]  %s1874_s9, 16, %s133_s23, [#allocation18]  }
  0x68   :  { %s1485_s30 = smov [#allocation20]   ;;  %s1486_s5 = smov [#allocation23]  }
  0x69   :  { %s151_s18 = sshll.u32 %s1485_s30, 4  ;;  %s174_s29 = sshll.u32 %s1486_s5, 4  ;;  %s152_s18 = int_to_ptr.vmem [resolvable:$true] %s151_s18  ;;  %s175_s29 = int_to_ptr.vmem [resolvable:$true] %s174_s29 }
  0x6a   :  { %s1172_s3 = scalar_lea.hbm %s1876_s11, 1024 }
  0x6b   :  { %p1173_p12 = scmp.ne.s32.totalorder %s1876_s11, %s1172_s3  ;;  %p1176_p13 = scmp.lt.u32.totalorder %s1172_s3, %s1876_s11 }
  0x6d   :  { %p1178_p0 = pnand %p1176_p13, %p1173_p12 }
  0x6f   :  { %1181 = shalt.err (!%p1178_p0)
}
  0x70   :  { %s1182_s9 = scalar_lea.vmem %s152_s18, 1024  ;;  %p1187_p2 = scmp.lt.s32.totalorder %s152_s18, %s152_s18 }
  0x71   :  { %p1183_p1 = scmp.ne.s32.totalorder %s152_s18, %s1182_s9  ;;  %p1188_p3 = scmp.lt.s32.totalorder %s1182_s9, %s1182_s9 }
  0x73   :  { %p1189_p4 = por %p1188_p3, %p1187_p2 }
  0x75   :  { %p1190_p5 = pnand %p1189_p4, %p1183_p1 }
  0x77   :  { %1193 = shalt.err (!%p1190_p5)
}
  0x78   :  { %157 = dma.hbm_to_vmem [thread:$0]  %s1876_s11, 1024, %s152_s18, [#allocation21], %s1479_s20, %s1479_s20, %s1480_s21  }
  0x79   :  { %s1194_s0 = scalar_lea.hbm %s1878_s13, 16 }
  0x7a   :  { %p1195_p6 = scmp.ne.s32.totalorder %s1878_s13, %s1194_s0  ;;  %p1198_p7 = scmp.lt.u32.totalorder %s1194_s0, %s1878_s13 }
  0x7c   :  { %p1200_p8 = pnand %p1198_p7, %p1195_p6 }
  0x7e   :  { %1203 = shalt.err (!%p1200_p8)
}
  0x7f   :  { %s1204_s19 = scalar_lea.vmem %s175_s29, 16  ;;  %s1208_s1 = scalar_lea.vmem %s175_s29, 32 }
  0x80   :  { %p1205_p9 = scmp.ne.s32.totalorder %s175_s29, %s1204_s19  ;;  %p1209_p10 = scmp.lt.s32.totalorder %s175_s29, %s175_s29 }
  0x81   :  { %p1210_p11 = scmp.lt.s32.totalorder %s1208_s1, %s1204_s19 }
  0x83   :  { %p1211_p12 = por %p1210_p11, %p1209_p10 }
  0x85   :  { %p1212_p13 = pnand %p1211_p12, %p1205_p9 }
  0x87   :  { %1215 = shalt.err (!%p1212_p13)
}
  0x88   :  { %177 = dma.hbm_to_vmem [thread:$0]  %s1878_s13, 16, %s175_s29, [#allocation24]  }
  0x89   :  { %s1487_s3 = smov [#allocation26]   ;;  %s1488_s25 = smov [#allocation2]  }
  0x8a   :  { %s196_s26 = sshll.u32 %s1487_s3, 4  ;;  %s38_s22 = sshll.u32 %s1488_s25, 4  ;;  %s197_s26 = int_to_ptr.vmem [resolvable:$true] %s196_s26  ;;  %s39_s22 = int_to_ptr.vmem [resolvable:$true] %s38_s22 }
  0x8b   :  { %s1216_s23 = scalar_lea.hbm %s1880_s15, 16 }
  0x8c   :  { %p1217_p0 = scmp.ne.s32.totalorder %s1880_s15, %s1216_s23  ;;  %p1220_p1 = scmp.lt.u32.totalorder %s1216_s23, %s1880_s15 }
  0x8e   :  { %p1222_p2 = pnand %p1220_p1, %p1217_p0 }
  0x90   :  { %1225 = shalt.err (!%p1222_p2)
}
  0x91   :  { %s1226_s13 = scalar_lea.vmem %s197_s26, 16  ;;  %s1230_s29 = scalar_lea.vmem %s197_s26, 32 }
  0x92   :  { %p1227_p3 = scmp.ne.s32.totalorder %s197_s26, %s1226_s13  ;;  %p1231_p4 = scmp.lt.s32.totalorder %s197_s26, %s197_s26 }
  0x93   :  { %p1232_p5 = scmp.lt.s32.totalorder %s1230_s29, %s1226_s13 }
  0x95   :  { %p1233_p6 = por %p1232_p5, %p1231_p4 }
  0x97   :  { %p1234_p7 = pnand %p1233_p6, %p1227_p3 }
  0x99   :  { %1237 = shalt.err (!%p1234_p7)
}
  0x9a   :  { %199 = dma.hbm_to_vmem [thread:$0]  %s1880_s15, 16, %s197_s26, [#allocation27]  }
  0x9b   :  { %s1892_s19 = sld [smem:[#allocation40_spill]] }
  0xa1   :  { %s1238_s1 = scalar_lea.hbm %s1892_s19, 128 }
  0xa2   :  { %p1239_p8 = scmp.ne.s32.totalorder %s1892_s19, %s1238_s1  ;;  %p1242_p9 = scmp.lt.u32.totalorder %s1238_s1, %s1892_s19 }
  0xa4   :  { %p1244_p10 = pnand %p1242_p9, %p1239_p8 }
  0xa6   :  { %1247 = shalt.err (!%p1244_p10)
}
  0xa7   :  { %s1248_s24 = scalar_lea.vmem %s39_s22, 128  ;;  %p1253_p12 = scmp.lt.s32.totalorder %s39_s22, %s39_s22 }
  0xa8   :  { %p1249_p11 = scmp.ne.s32.totalorder %s39_s22, %s1248_s24  ;;  %p1254_p13 = scmp.lt.s32.totalorder %s1248_s24, %s1248_s24 }
  0xaa   :  { %p1255_p0 = por %p1254_p13, %p1253_p12 }
  0xac   :  { %p1256_p1 = pnand %p1255_p0, %p1249_p11 }
  0xae   :  { %1259 = shalt.err (!%p1256_p1)
}
  0xaf   :  { %41 = dma.hbm_to_vmem [thread:$0]  %s1892_s19, 128, %s39_s22, [#allocation3]  }
  0xb0   :  { %s1489_s9 = smov [#allocation7]   ;;  %s1490_s27 = smov [#allocation10]  }
  0xb1   :  { %s60_s23 = sshll.u32 %s1489_s9, 4  ;;  %s80_s16 = sshll.u32 %s1490_s27, 4  ;;  %s61_s23 = int_to_ptr.vmem [resolvable:$true] %s60_s23  ;;  %s81_s16 = int_to_ptr.vmem [resolvable:$true] %s80_s16 }
  0xb2   :  { %s1260_s13 = scalar_lea.hbm %s1867_s2, 16 }
  0xb3   :  { %p1261_p2 = scmp.ne.s32.totalorder %s1867_s2, %s1260_s13  ;;  %p1264_p3 = scmp.lt.u32.totalorder %s1260_s13, %s1867_s2 }
  0xb5   :  { %p1266_p4 = pnand %p1264_p3, %p1261_p2 }
  0xb7   :  { %1269 = shalt.err (!%p1266_p4)
}
  0xb8   :  { %s1270_s22 = scalar_lea.vmem %s61_s23, 16  ;;  %s1274_s5 = scalar_lea.vmem %s61_s23, 32 }
  0xb9   :  { %p1271_p5 = scmp.ne.s32.totalorder %s61_s23, %s1270_s22  ;;  %p1275_p6 = scmp.lt.s32.totalorder %s61_s23, %s61_s23 }
  0xba   :  { %p1276_p7 = scmp.lt.s32.totalorder %s1274_s5, %s1270_s22 }
  0xbc   :  { %p1277_p8 = por %p1276_p7, %p1275_p6 }
  0xbe   :  { %p1278_p9 = pnand %p1277_p8, %p1271_p5 }
  0xc0   :  { %1281 = shalt.err (!%p1278_p9)
}
  0xc1   :  { %63 = dma.hbm_to_vmem [thread:$0]  %s1867_s2, 16, %s61_s23, [#allocation6]  }
  0xc2   :  { %s1282_s3 = scalar_lea.hbm %s1869_s4, 16 }
  0xc3   :  { %p1283_p10 = scmp.ne.s32.totalorder %s1869_s4, %s1282_s3  ;;  %p1286_p11 = scmp.lt.u32.totalorder %s1282_s3, %s1869_s4 }
  0xc5   :  { %p1288_p12 = pnand %p1286_p11, %p1283_p10 }
  0xc7   :  { %1291 = shalt.err (!%p1288_p12)
}
  0xc8   :  { %s1292_s9 = scalar_lea.vmem %s81_s16, 16  ;;  %s1296_s27 = scalar_lea.vmem %s81_s16, 32 }
  0xc9   :  { %p1293_p13 = scmp.ne.s32.totalorder %s81_s16, %s1292_s9  ;;  %p1297_p0 = scmp.lt.s32.totalorder %s81_s16, %s81_s16 }
  0xca   :  { %p1298_p1 = scmp.lt.s32.totalorder %s1296_s27, %s1292_s9 }
  0xcc   :  { %p1299_p2 = por %p1298_p1, %p1297_p0 }
  0xce   :  { %p1300_p3 = pnand %p1299_p2, %p1293_p13 }
  0xd0   :  { %1303 = shalt.err (!%p1300_p3)
}
  0xd1   :  { %83 = dma.hbm_to_vmem [thread:$0]  %s1869_s4, 16, %s81_s16, [#allocation9]  }
  0xd2   :  { %s1491_s17 = smov [#allocation13]   ;;  %s1492_s13 = smov [#allocation16]  }
  0xd3   :  { %s99_s0 = sshll.u32 %s1491_s17, 4  ;;  %s122_s29 = sshll.u32 %s1492_s13, 4  ;;  %s100_s0 = int_to_ptr.vmem [resolvable:$true] %s99_s0  ;;  %s123_s29 = int_to_ptr.vmem [resolvable:$true] %s122_s29 }
  0xd4   :  { %s1304_s30 = scalar_lea.hbm %s1871_s6, 1024 }
  0xd5   :  { %p1305_p4 = scmp.ne.s32.totalorder %s1871_s6, %s1304_s30  ;;  %p1308_p5 = scmp.lt.u32.totalorder %s1304_s30, %s1871_s6 }
  0xd7   :  { %p1310_p6 = pnand %p1308_p5, %p1305_p4 }
  0xd9   :  { %1313 = shalt.err (!%p1310_p6)
}
  0xda   :  { %s1314_s4 = scalar_lea.vmem %s100_s0, 1024  ;;  %p1319_p8 = scmp.lt.s32.totalorder %s100_s0, %s100_s0 }
  0xdb   :  { %p1315_p7 = scmp.ne.s32.totalorder %s100_s0, %s1314_s4  ;;  %p1320_p9 = scmp.lt.s32.totalorder %s1314_s4, %s1314_s4 }
  0xdd   :  { %p1321_p10 = por %p1320_p9, %p1319_p8 }
  0xdf   :  { %p1322_p11 = pnand %p1321_p10, %p1315_p7 }
  0xe1   :  { %1325 = shalt.err (!%p1322_p11)
}
  0xe2   :  { %105 = dma.hbm_to_vmem [thread:$0]  %s1871_s6, 1024, %s100_s0, [#allocation12], %s1479_s20, %s1479_s20, %s1480_s21  }
  0xe3   :  { %s1326_s25 = scalar_lea.hbm %s1873_s8, 16 }
  0xe4   :  { %p1327_p12 = scmp.ne.s32.totalorder %s1873_s8, %s1326_s25  ;;  %p1330_p13 = scmp.lt.u32.totalorder %s1326_s25, %s1873_s8 }
  0xe6   :  { %p1332_p0 = pnand %p1330_p13, %p1327_p12 }
  0xe8   :  { %1335 = shalt.err (!%p1332_p0)
}
  0xe9   :  { %s1336_s27 = scalar_lea.vmem %s123_s29, 16  ;;  %s1340_s2 = scalar_lea.vmem %s123_s29, 32 }
  0xea   :  { %p1337_p1 = scmp.ne.s32.totalorder %s123_s29, %s1336_s27  ;;  %p1341_p2 = scmp.lt.s32.totalorder %s123_s29, %s123_s29 }
  0xeb   :  { %p1342_p3 = scmp.lt.s32.totalorder %s1340_s2, %s1336_s27 }
  0xed   :  { %p1343_p4 = por %p1342_p3, %p1341_p2 }
  0xef   :  { %p1344_p5 = pnand %p1343_p4, %p1337_p1 }
  0xf1   :  { %1347 = shalt.err (!%p1344_p5)
}
  0xf2   :  { %125 = dma.hbm_to_vmem [thread:$0]  %s1873_s8, 16, %s123_s29, [#allocation15]  }
  0xf3   :  { %s1493_s17 = smov [#allocation19]   ;;  %s1494_s13 = smov [#allocation22]  }
  0xf4   :  { %s142_s0 = sshll.u32 %s1493_s17, 4  ;;  %s164_s7 = sshll.u32 %s1494_s13, 4  ;;  %s143_s0 = int_to_ptr.vmem [resolvable:$true] %s142_s0  ;;  %s165_s7 = int_to_ptr.vmem [resolvable:$true] %s164_s7 }
  0xf5   :  { %s1348_s22 = scalar_lea.hbm %s1875_s10, 16 }
  0xf6   :  { %p1349_p6 = scmp.ne.s32.totalorder %s1875_s10, %s1348_s22  ;;  %p1352_p7 = scmp.lt.u32.totalorder %s1348_s22, %s1875_s10 }
  0xf8   :  { %p1354_p8 = pnand %p1352_p7, %p1349_p6 }
  0xfa   :  { %1357 = shalt.err (!%p1354_p8)
}
  0xfb   :  { %s1358_s8 = scalar_lea.vmem %s143_s0, 16  ;;  %s1362_s29 = scalar_lea.vmem %s143_s0, 32 }
  0xfc   :  { %p1359_p9 = scmp.ne.s32.totalorder %s143_s0, %s1358_s8  ;;  %p1363_p10 = scmp.lt.s32.totalorder %s143_s0, %s143_s0 }
  0xfd   :  { %p1364_p11 = scmp.lt.s32.totalorder %s1362_s29, %s1358_s8 }
  0xff   :  { %p1365_p12 = por %p1364_p11, %p1363_p10 }
 0x101   :  { %p1366_p13 = pnand %p1365_p12, %p1359_p9 }
 0x103   :  { %1369 = shalt.err (!%p1366_p13)
}
 0x104   :  { %145 = dma.hbm_to_vmem [thread:$0]  %s1875_s10, 16, %s143_s0, [#allocation18]  }
 0x105   :  { %s1370_s25 = scalar_lea.hbm %s1877_s12, 16 }
 0x106   :  { %p1371_p0 = scmp.ne.s32.totalorder %s1877_s12, %s1370_s25  ;;  %p1374_p1 = scmp.lt.u32.totalorder %s1370_s25, %s1877_s12 }
 0x108   :  { %p1376_p2 = pnand %p1374_p1, %p1371_p0 }
 0x10a   :  { %1379 = shalt.err (!%p1376_p2)
}
 0x10b   :  { %s1380_s27 = scalar_lea.vmem %s165_s7, 16  ;;  %s1384_s2 = scalar_lea.vmem %s165_s7, 32 }
 0x10c   :  { %p1381_p3 = scmp.ne.s32.totalorder %s165_s7, %s1380_s27  ;;  %p1385_p4 = scmp.lt.s32.totalorder %s165_s7, %s165_s7 }
 0x10d   :  { %p1386_p5 = scmp.lt.s32.totalorder %s1384_s2, %s1380_s27 }
 0x10f   :  { %p1387_p6 = por %p1386_p5, %p1385_p4 }
 0x111   :  { %p1388_p7 = pnand %p1387_p6, %p1381_p3 }
 0x113   :  { %1391 = shalt.err (!%p1388_p7)
}
 0x114   :  { %167 = dma.hbm_to_vmem [thread:$0]  %s1877_s12, 16, %s165_s7, [#allocation21]  }
 0x115   :  { %s1495_s23 = smov [#allocation25]   ;;  %s1496_s0 = smov [#allocation28]  }
 0x116   :  { %s183_s17 = sshll.u32 %s1495_s23, 4  ;;  %s206_s13 = sshll.u32 %s1496_s0, 4  ;;  %s184_s17 = int_to_ptr.vmem [resolvable:$true] %s183_s17  ;;  %s207_s13 = int_to_ptr.vmem [resolvable:$true] %s206_s13 }
 0x117   :  { %s1392_s22 = scalar_lea.hbm %s1879_s14, 1024 }
 0x118   :  { %p1393_p8 = scmp.ne.s32.totalorder %s1879_s14, %s1392_s22  ;;  %p1396_p9 = scmp.lt.u32.totalorder %s1392_s22, %s1879_s14 }
 0x11a   :  { %p1398_p10 = pnand %p1396_p9, %p1393_p8 }
 0x11c   :  { %1401 = shalt.err (!%p1398_p10)
}
 0x11d   :  { %s1402_s12 = scalar_lea.vmem %s184_s17, 1024  ;;  %p1407_p12 = scmp.lt.s32.totalorder %s184_s17, %s184_s17 }
 0x11e   :  { %p1403_p11 = scmp.ne.s32.totalorder %s184_s17, %s1402_s12  ;;  %p1408_p13 = scmp.lt.s32.totalorder %s1402_s12, %s1402_s12 }
 0x120   :  { %p1409_p0 = por %p1408_p13, %p1407_p12 }
 0x122   :  { %p1410_p1 = pnand %p1409_p0, %p1403_p11 }
 0x124   :  { %1413 = shalt.err (!%p1410_p1)
}
 0x125   :  { %189 = dma.hbm_to_vmem [thread:$0]  %s1879_s14, 1024, %s184_s17, [#allocation24], %s1479_s20, %s1479_s20, %s1480_s21  }
 0x126   :  { %s1893_s11 = sld [smem:[#allocation42_spill]] }
 0x12c   :  { %s1414_s18 = scalar_lea.hbm %s1893_s11, 16 }
 0x12d   :  { %p1415_p2 = scmp.ne.s32.totalorder %s1893_s11, %s1414_s18  ;;  %p1418_p3 = scmp.lt.u32.totalorder %s1414_s18, %s1893_s11 }
 0x12f   :  { %p1420_p4 = pnand %p1418_p3, %p1415_p2 }
 0x131   :  { %1423 = shalt.err (!%p1420_p4)
}
 0x132   :  { %s1424_s26 = scalar_lea.vmem %s207_s13, 16  ;;  %s1428_s9 = scalar_lea.vmem %s207_s13, 32 }
 0x133   :  { %p1425_p5 = scmp.ne.s32.totalorder %s207_s13, %s1424_s26  ;;  %p1429_p6 = scmp.lt.s32.totalorder %s207_s13, %s207_s13 }
 0x134   :  { %p1430_p7 = scmp.lt.s32.totalorder %s1428_s9, %s1424_s26 }
 0x136   :  { %p1431_p8 = por %p1430_p7, %p1429_p6 }
 0x138   :  { %p1432_p9 = pnand %p1431_p8, %p1425_p5 }
 0x13a   :  { %1435 = shalt.err (!%p1432_p9)
}
 0x13b   :  { %209 = dma.hbm_to_vmem [thread:$0]  %s1893_s11, 16, %s207_s13, [#allocation27]  }
 0x13c   :  { %1458 = dma.done.wait [#allocation3], 128  }
 0x13d   :  { %1459 = vsyncadd [#allocation3], 4294967168 }
 0x13e   :  { %1460 = dma.done.wait [#allocation6], 1040  }
 0x13f   :  { %1461 = vsyncadd [#allocation6], 4294966256 }
 0x140   :  { %1462 = dma.done.wait [#allocation9], 32  }
 0x141   :  { %1463 = vsyncadd [#allocation9], 4294967264 }
 0x142   :  { %1464 = dma.done.wait [#allocation12], 1040  }
 0x143   :  { %1465 = vsyncadd [#allocation12], 4294966256 }
 0x144   :  { %1466 = dma.done.wait [#allocation15], 32  }
 0x145   :  { %1467 = vsyncadd [#allocation15], 4294967264 }
 0x146   :  { %1468 = dma.done.wait [#allocation18], 32  }
 0x147   :  { %1469 = vsyncadd [#allocation18], 4294967264 }
 0x148   :  { %1470 = dma.done.wait [#allocation21], 1040  }
 0x149   :  { %1471 = vsyncadd [#allocation21], 4294966256 }
 0x14a   :  { %1472 = dma.done.wait [#allocation24], 1040  }
 0x14b   :  { %1473 = vsyncadd [#allocation24], 4294966256 }
 0x14c   :  { %1474 = dma.done.wait [#allocation27], 32  }
 0x14d   :  { %1475 = vsyncadd [#allocation27], 4294967264  ;;  %v1497_v0 = vmov 0.0   ;;  %vm1498_vm0 = vmmov 0   ;;  %v1026_v1 = vld [vmem:[#allocation5] sm:$0xff]   ;;  %v1027_v2 = vld [vmem:[#allocation5 + $0x8] sm:$0xff]   ;;  %v408_v47 = vlaneseq }
 0x14e   :  { %924 = vmatprep.subr.bf16.mxu0 %v1497_v0  ;;  %940 = vmatprep.mubr.msk.bf16.mxu0 %vm1498_vm0, %v1497_v0  ;;  %v1028_v3 = vld [vmem:[#allocation5 + $0x10] sm:$0xff]   ;;  %v1029_v4 = vld [vmem:[#allocation5 + $0x18] sm:$0xff]   ;;  %v1030_v5 = vld [vmem:[#allocation5 + $0x20] sm:$0xff]   ;;  %s1499_s21 = smov [#allocation29]  }
 0x14f   :  { %944 = vmatprep.subr.bf16.mxu1 %v1497_v0  ;;  %960 = vmatprep.mubr.msk.bf16.mxu1 %vm1498_vm0, %v1497_v0  ;;  %v1031_v6 = vld [vmem:[#allocation5 + $0x28] sm:$0xff]   ;;  %v1032_v7 = vld [vmem:[#allocation5 + $0x30] sm:$0xff]   ;;  %v1033_v8 = vld [vmem:[#allocation5 + $0x38] sm:$0xff]   ;;  %v1830_v48 = vshrl.u32 %v408_v47, 7  ;;  %s829_s27 = sshll.u32 %s1499_s21, 4  ;;  %s830_s27 = int_to_ptr.vmem [resolvable:$true] %s829_s27 }
 0x150   :  { %925 = vmatpush3.bf16.msra.mxu0 %v1026_v1  ;;  %v262_v9 = vld [vmem:[#allocation2] sm:$0xff]  ;;  %v1034_v11 = vld [vmem:[#allocation13] sm:$0xff]   ;;  %v1035_v12 = vld [vmem:[#allocation13 + $0x8] sm:$0xff]   ;;  %s1436_s2 = scalar_lea.vmem %s830_s27, 128  ;;  %p1441_p11 = scmp.lt.s32.totalorder %s830_s27, %s830_s27 }
 0x151   :  { %926 = vmatprep.subr.bf16.mxu0 %v1497_v0  ;;  %v263_v10 = vpack.c.bf16 %v262_v9, %v262_v9  ;;  %945 = vmatpush3.bf16.msra.mxu1 %v1034_v11  ;;  %v1036_v13 = vld [vmem:[#allocation13 + $0x10] sm:$0xff]   ;;  %v1037_v14 = vld [vmem:[#allocation13 + $0x18] sm:$0xff]   ;;  %v1038_v15 = vld [vmem:[#allocation13 + $0x20] sm:$0xff]   ;;  %v410_v50 = vsub.s32 0, %v1830_v48  ;;  %p1437_p10 = scmp.ne.s32.totalorder %s830_s27, %s1436_s2  ;;  %p1442_p12 = scmp.lt.s32.totalorder %s1436_s2, %s1436_s2 }
 0x152   :  { %946 = vmatprep.subr.bf16.mxu1 %v1497_v0  ;;  %v1039_v16 = vld [vmem:[#allocation13 + $0x28] sm:$0xff]   ;;  %v1040_v17 = vld [vmem:[#allocation13 + $0x30] sm:$0xff]   ;;  %v1041_v18 = vld [vmem:[#allocation13 + $0x38] sm:$0xff]  }
 0x153   :  { %v854_v19 = vld [vmem:[#allocation7] ss:$0 sm:$0xff]  ;;  %v855_v21 = vld [vmem:[#allocation8] ss:$0 sm:$0xff]  ;;  %v406_v49 = vld [vmem:[#allocation10] sm:$0x1]  ;;  %p1443_p13 = por %p1442_p12, %p1441_p11 }
 0x154   :  { %927 = vmatpush3.bf16.msra.mxu0 %v1027_v2  ;;  %v856_v55 = vld [vmem:[#allocation11] ss:$0 sm:$0xff]  ;;  %v1042_v59 = vld [vmem:[#allocation20] sm:$0xff]   ;;  %v1043_v60 = vld [vmem:[#allocation20 + $0x8] sm:$0xff]  }
 0x155   :  { %928 = vmatprep.subr.bf16.mxu0 %v1497_v0  ;;  %947 = vmatpush3.bf16.msra.mxu1 %v1035_v12  ;;  %v1044_v61 = vld [vmem:[#allocation20 + $0x10] sm:$0xff]   ;;  %v1045_v62 = vld [vmem:[#allocation20 + $0x18] sm:$0xff]   ;;  %v1046_v63 = vld [vmem:[#allocation20 + $0x20] sm:$0xff]   ;;  %p1444_p0 = pnand %p1443_p13, %p1437_p10 }
 0x156   :  { %948 = vmatprep.subr.bf16.mxu1 %v1497_v0  ;;  %v1047_v1 = vld [vmem:[#allocation20 + $0x28] sm:$0xff]   ;;  %v1048_v2 = vld [vmem:[#allocation20 + $0x30] sm:$0xff]   ;;  %v866_v12 = vld [vmem:[#allocation16] ss:$0 sm:$0xff] }
 0x157   :  { %v1055_v9 = vld [vmem:[#allocation25 + $0x28] sm:$0xff]   ;;  %v1056_v47 = vld [vmem:[#allocation25 + $0x30] sm:$0xff]  }
 0x158   :  { %929 = vmatpush3.bf16.msra.mxu0 %v1028_v3  ;;  %v1049_v3 = vld [vmem:[#allocation20 + $0x38] sm:$0xff]  }
 0x159   :  { %930 = vmatprep.subr.bf16.mxu0 %v1497_v0  ;;  %949 = vmatpush3.bf16.msra.mxu1 %v1036_v13 }
 0x15a   :  { %950 = vmatprep.subr.bf16.mxu1 %v1497_v0 }
 0x15c   :  { %931 = vmatpush3.bf16.msra.mxu0 %v1029_v4  ;;  %v1050_v4 = vld [vmem:[#allocation25] sm:$0xff]  }
 0x15d   :  { %932 = vmatprep.subr.bf16.mxu0 %v1497_v0  ;;  %951 = vmatpush3.bf16.msra.mxu1 %v1037_v14 }
 0x15e   :  { %952 = vmatprep.subr.bf16.mxu1 %v1497_v0 }
 0x160   :  { %933 = vmatpush3.bf16.msra.mxu0 %v1030_v5  ;;  %v1051_v5 = vld [vmem:[#allocation25 + $0x8] sm:$0xff]  }
 0x161   :  { %934 = vmatprep.subr.bf16.mxu0 %v1497_v0  ;;  %953 = vmatpush3.bf16.msra.mxu1 %v1038_v15 }
 0x162   :  { %954 = vmatprep.subr.bf16.mxu1 %v1497_v0 }
 0x164   :  { %935 = vmatpush3.bf16.msra.mxu0 %v1031_v6  ;;  %v1052_v6 = vld [vmem:[#allocation25 + $0x10] sm:$0xff]  }
 0x165   :  { %936 = vmatprep.subr.bf16.mxu0 %v1497_v0  ;;  %955 = vmatpush3.bf16.msra.mxu1 %v1039_v16 }
 0x166   :  { %956 = vmatprep.subr.bf16.mxu1 %v1497_v0 }
 0x168   :  { %937 = vmatpush3.bf16.msra.mxu0 %v1032_v7  ;;  %v1053_v7 = vld [vmem:[#allocation25 + $0x18] sm:$0xff]  }
 0x169   :  { %938 = vmatprep.subr.bf16.mxu0 %v1497_v0  ;;  %957 = vmatpush3.bf16.msra.mxu1 %v1040_v17 }
 0x16a   :  { %958 = vmatprep.subr.bf16.mxu1 %v1497_v0 }
 0x16c   :  { %939 = vmatpush3.bf16.msra.mxu0 %v1033_v8  ;;  %v1054_v8 = vld [vmem:[#allocation25 + $0x20] sm:$0xff]  }
 0x16d   :  { %964 = vmatprep.subr.bf16.mxu0 %v1497_v0  ;;  %959 = vmatpush3.bf16.msra.mxu1 %v1041_v18 }
 0x16e   :  { %984 = vmatprep.subr.bf16.mxu1 %v1497_v0 }
 0x16f   :  { %941 = vmatmul.mubr.bf16.vlgmr.msra.gmra.mrb[0].mxu0 %v263_v10  ;;  %v865_v10 = vld [vmem:[#allocation14] ss:$0 sm:$0xff] }
 0x170   :  { %980 = vmatprep.mubr.msk.bf16.mxu0 %vm1498_vm0, %v1497_v0  ;;  %965 = vmatpush3.bf16.msra.mxu0 %v1042_v59  ;;  %v886_v59 = vld [vmem:[#allocation26] ss:$0 sm:$0xff] }
 0x171   :  { %966 = vmatprep.subr.bf16.mxu0 %v1497_v0 }
 0x174   :  { %967 = vmatpush3.bf16.msra.mxu0 %v1043_v60 }
 0x175   :  { %968 = vmatprep.subr.bf16.mxu0 %v1497_v0 }
 0x178   :  { %969 = vmatpush3.bf16.msra.mxu0 %v1044_v61  ;;  %v887_v61 = vld [vmem:[#allocation28] ss:$0 sm:$0xff] }
 0x179   :  { %970 = vmatprep.subr.bf16.mxu0 %v1497_v0 }
 0x17c   :  { %971 = vmatpush3.bf16.msra.mxu0 %v1045_v62 }
 0x17d   :  { %972 = vmatprep.subr.bf16.mxu0 %v1497_v0 }
 0x180   :  { %973 = vmatpush3.bf16.msra.mxu0 %v1046_v63 }
 0x181   :  { %974 = vmatprep.subr.bf16.mxu0 %v1497_v0 }
 0x184   :  { %975 = vmatpush3.bf16.msra.mxu0 %v1047_v1 }
 0x185   :  { %976 = vmatprep.subr.bf16.mxu0 %v1497_v0 }
 0x188   :  { %977 = vmatpush3.bf16.msra.mxu0 %v1048_v2 }
 0x189   :  { %978 = vmatprep.subr.bf16.mxu0 %v1497_v0 }
 0x18c   :  { %979 = vmatpush3.bf16.msra.mxu0 %v1049_v3 }
 0x242   :  { %v362_v20 = vpop.f32.mrb[0].mxu0 }
 0x243   :  { %v375_v22 = vmul.f32 %v854_v19, %v362_v20  ;;  %v942_v23 = vpop.f32.mrb[1].mxu0 }
 0x244   :  { %v365_v24 = vpop.f32.mrb[2].mxu0 }
 0x245   :  { %v383_v25 = vadd.f32 %v855_v21, %v375_v22  ;;  %v943_v26 = vpop.f32.mrb[3].mxu0 }
 0x247   :  { %v384_v27 = vmax.f32 %v383_v25, 0.0 }
 0x249   :  { %v385_v28 = vrot.slane %v384_v27, 4  ;;  %v391_v29 = vmul.f32 %v384_v27, %v384_v27 }
 0x24b   :  { %v386_v30 = vadd.f32 %v385_v28, %v384_v27  ;;  %v392_v31 = vrot.slane %v391_v29, 4 }
 0x24d   :  { %v387_v32 = vrot.slane %v386_v30, 2  ;;  %v393_v33 = vadd.f32 %v392_v31, %v391_v29 }
 0x24f   :  { %v394_v34 = vrot.slane %v393_v33, 2  ;;  %v388_v35 = vadd.f32 %v387_v32, %v386_v30 }
 0x251   :  { %v395_v36 = vadd.f32 %v394_v34, %v393_v33  ;;  %v389_v37 = vrot.slane %v388_v35, 1 }
 0x253   :  { %v396_v38 = vrot.slane %v395_v36, 1  ;;  %v390_v39 = vadd.f32 %v389_v37, %v388_v35 }
 0x255   :  { %v397_v40 = vadd.f32 %v396_v38, %v395_v36  ;;  %v398_v41 = vmul.f32 0.125, %v390_v39  ;;  %v564_v38 = vld [vmem:[#allocation17] sm:$0x1] }
 0x257   :  { %v399_v42 = vmul.f32 0.125, %v397_v40  ;;  %v400_v43 = vmul.f32 %v398_v41, %v398_v41  ;;  %v403_v53 = vsub.f32 %v384_v27, %v398_v41 }
 0x259   :  { %v401_v44 = vsub.f32 %v399_v42, %v400_v43  ;;  %v867_v43 = vld [vmem:[#allocation19] ss:$0 sm:$0xff] }
 0x25b   :  { %v402_v45 = vmax.f32 %v401_v44, 0.0 }
 0x25d   :  { %v404_v46 = vadd.f32 1e-05, %v402_v45 }
 0x25f   :  { %1058 = vrsqrt.f32 %v404_v46 }
 0x269   :  { %v1059_v51 = vpop.eup %1058 }
 0x26a   :  { %v407_v52 = vmul.f32 %v1059_v51, %v406_v49  ;;  %v1057_v49 = vld [vmem:[#allocation25 + $0x38] sm:$0xff]  }
 0x26b   :  { %v876_v51 = vld [vmem:[#allocation22] ss:$0 sm:$0xff] }
 0x26c   :  { %v411_v54 = vrot.slane %v407_v52, %v410_v50 }
 0x26e   :  { %v412_v56 = vmul.f32 %v411_v54, %v403_v53  ;;  %v877_v53 = vld [vmem:[#allocation23] ss:$0 sm:$0xff] }
 0x270   :  { %v420_v57 = vadd.f32 %v856_v55, %v412_v56 }
 0x272   :  { %v421_v58 = vpack.c.bf16 %v420_v57, %v420_v57 }
 0x274   :  { %961 = vmatmul.mubr.bf16.vlgmr.msra.gmra.mrb[0].mxu1 %v421_v58 }
 0x275   :  { %1000 = vmatprep.mubr.msk.bf16.mxu1 %vm1498_vm0, %v1497_v0  ;;  %985 = vmatpush3.bf16.msra.mxu1 %v1050_v4 }
 0x276   :  { %986 = vmatprep.subr.bf16.mxu1 %v1497_v0 }
 0x279   :  { %987 = vmatpush3.bf16.msra.mxu1 %v1051_v5 }
 0x27a   :  { %988 = vmatprep.subr.bf16.mxu1 %v1497_v0 }
 0x27d   :  { %989 = vmatpush3.bf16.msra.mxu1 %v1052_v6 }
 0x27e   :  { %990 = vmatprep.subr.bf16.mxu1 %v1497_v0 }
 0x281   :  { %991 = vmatpush3.bf16.msra.mxu1 %v1053_v7 }
 0x282   :  { %992 = vmatprep.subr.bf16.mxu1 %v1497_v0 }
 0x285   :  { %993 = vmatpush3.bf16.msra.mxu1 %v1054_v8 }
 0x286   :  { %994 = vmatprep.subr.bf16.mxu1 %v1497_v0 }
 0x289   :  { %995 = vmatpush3.bf16.msra.mxu1 %v1055_v9 }
 0x28a   :  { %996 = vmatprep.subr.bf16.mxu1 %v1497_v0 }
 0x28d   :  { %997 = vmatpush3.bf16.msra.mxu1 %v1056_v47 }
 0x28e   :  { %998 = vmatprep.subr.bf16.mxu1 %v1497_v0 }
 0x291   :  { %999 = vmatpush3.bf16.msra.mxu1 %v1057_v49 }
 0x347   :  { %v520_v11 = vpop.f32.mrb[0].mxu1 }
 0x348   :  { %v533_v13 = vmul.f32 %v865_v10, %v520_v11  ;;  %v962_v14 = vpop.f32.mrb[1].mxu1 }
 0x349   :  { %v523_v15 = vpop.f32.mrb[2].mxu1 }
 0x34a   :  { %v541_v16 = vadd.f32 %v866_v12, %v533_v13  ;;  %v963_v17 = vpop.f32.mrb[3].mxu1 }
 0x34c   :  { %v542_v18 = vmax.f32 %v541_v16, 0.0 }
 0x34e   :  { %v543_v19 = vrot.slane %v542_v18, 4  ;;  %v549_v20 = vmul.f32 %v542_v18, %v542_v18 }
 0x350   :  { %v544_v21 = vadd.f32 %v543_v19, %v542_v18  ;;  %v550_v22 = vrot.slane %v549_v20, 4 }
 0x352   :  { %v545_v23 = vrot.slane %v544_v21, 2  ;;  %v551_v24 = vadd.f32 %v550_v22, %v549_v20 }
 0x354   :  { %v546_v25 = vadd.f32 %v545_v23, %v544_v21  ;;  %v552_v26 = vrot.slane %v551_v24, 2 }
 0x356   :  { %v547_v27 = vrot.slane %v546_v25, 1  ;;  %v553_v28 = vadd.f32 %v552_v26, %v551_v24 }
 0x358   :  { %v548_v29 = vadd.f32 %v547_v27, %v546_v25  ;;  %v554_v30 = vrot.slane %v553_v28, 1 }
 0x35a   :  { %v555_v31 = vadd.f32 %v554_v30, %v553_v28  ;;  %v556_v32 = vmul.f32 0.125, %v548_v29 }
 0x35c   :  { %v557_v33 = vmul.f32 0.125, %v555_v31  ;;  %v558_v34 = vmul.f32 %v556_v32, %v556_v32  ;;  %v561_v41 = vsub.f32 %v542_v18, %v556_v32 }
 0x35e   :  { %v559_v35 = vsub.f32 %v557_v33, %v558_v34 }
 0x360   :  { %v560_v36 = vmax.f32 %v559_v35, 0.0 }
 0x362   :  { %v562_v37 = vadd.f32 1e-05, %v560_v36 }
 0x364   :  { %1060 = vrsqrt.f32 %v562_v37 }
 0x36e   :  { %v1061_v39 = vpop.eup %1060 }
 0x36f   :  { %v565_v40 = vmul.f32 %v1061_v39, %v564_v38 }
 0x371   :  { %v569_v42 = vrot.slane %v565_v40, %v410_v50 }
 0x373   :  { %v570_v44 = vmul.f32 %v569_v42, %v561_v41 }
 0x375   :  { %v578_v45 = vadd.f32 %v867_v43, %v570_v44 }
 0x377   :  { %v579_v46 = vpack.c.bf16 %v578_v45, %v578_v45 }
 0x379   :  { %981 = vmatmul.mubr.bf16.vlgmr.msra.gmra.mrb[4].mxu0 %v579_v46 }
 0x44c   :  { %v678_v52 = vpop.f32.mrb[4].mxu0 }
 0x44d   :  { %v691_v54 = vmul.f32 %v876_v51, %v678_v52  ;;  %v982_v55 = vpop.f32.mrb[5].mxu0 }
 0x44e   :  { %v681_v56 = vpop.f32.mrb[6].mxu0 }
 0x44f   :  { %v699_v57 = vadd.f32 %v877_v53, %v691_v54  ;;  %v983_v48 = vpop.f32.mrb[7].mxu0 }
 0x451   :  { %v700_v50 = vmax.f32 %v699_v57, 0.0 }
 0x453   :  { %v701_v58 = vpack.c.bf16 %v700_v50, %v700_v50 }
 0x455   :  { %1001 = vmatmul.mubr.bf16.vlgmr.msra.gmra.mrb[4].mxu1 %v701_v58 }
 0x528   :  { %v800_v60 = vpop.f32.mrb[4].mxu1 }
 0x529   :  { %v813_v62 = vmul.f32 %v886_v59, %v800_v60  ;;  %v1002_v0 = vpop.f32.mrb[5].mxu1 }
 0x52a   :  { %v803_v63 = vpop.f32.mrb[6].mxu1 }
 0x52b   :  { %v821_v1 = vadd.f32 %v887_v61, %v813_v62  ;;  %v1003_v2 = vpop.f32.mrb[7].mxu1 }
 0x52d   :  { %822 = vst [vmem:[#allocation29] sm:$0xff] %v821_v1 }
 0x52e   :  { %1447 = shalt.err (!%p1444_p0)
}
 0x52f   :  { %s1894_s23 = sld [smem:[#allocation43_spill]] }
 0x535   :  { %s1448_s17 = scalar_lea.hbm %s1894_s23, 128 }
 0x536   :  { %p1449_p1 = scmp.ne.s32.totalorder %s1894_s23, %s1448_s17  ;;  %p1452_p2 = scmp.lt.u32.totalorder %s1448_s17, %s1894_s23 }
 0x538   :  { %p1454_p3 = pnand %p1452_p2, %p1449_p1 }
 0x53a   :  { %1457 = shalt.err (!%p1454_p3)
}
 0x53b   :  { %832 = dma.vmem_to_hbm [thread:$0]  %s830_s27, 128, %s1894_s23, [#allocation4]  }
 0x53c   :  { %1476 = dma.done.wait [#allocation4], 128  }
 0x53d   :  { %1477 = vsyncadd [#allocation4], 4294967168 }
 0x53e   :  { %836 = vsyncpa [#allocation3], 1 }
 0x53f   :  { %837 = vsyncpa [#allocation6], 1 }
 0x540   :  { %838 = vsyncpa [#allocation9], 1 }
 0x541   :  { %839 = vsyncpa [#allocation12], 1 }
 0x542   :  { %840 = vsyncpa [#allocation15], 1 }
 0x543   :  { %841 = vsyncpa [#allocation18], 1 }
 0x544   :  { %842 = vsyncpa [#allocation21], 1 }
 0x545   :  { %843 = vsyncpa [#allocation24], 1 }
 0x546   :  { %844 = vsyncpa [#allocation27], 1 }
 0x547   :  { %845 = vsyncpa [#allocation4], 1 }

</bundles_post_ra>
